<compile_context>
chip_gen: v7x
topology: tpu7x:2x2x1
jax: 0.10.0
libtpu: 0.0.40
codegen_flags: <defaults>
</compile_context>

<pallas_src>
import jax
import jax.numpy as jnp
from jax.experimental import pallas as pl
from jax.experimental.pallas import tpu as pltpu

_MIB = 1024 * 1024


# --------------------------------------------------------------------------- #
# Kernel
# --------------------------------------------------------------------------- #
def _fused_cheb_kernel(s_ref, wt_ref, wd_ref, b_ref, x_ref, o_ref):
    """Fused ChebConv tile: propagation + projection + bias, entirely in VMEM.

    s_ref : (Q*N, N)         stacked non-identity Chebyshev supports (resident)
    wt_ref: (Q, TT*F, TT*O)  block-diagonal per-polynomial projection weights (resident)
    wd_ref: (TT*F, TT*O)     block-diagonal folded identity ("direct") weights (resident)
    b_ref : (1, TT*O)        bias tiled across the time tile (resident, f32)
    x_ref : (1, N, TT*F)     input tile for (batch b, time-chunk tc)
    o_ref : (1, N, TT*O)     lane-dense output tile
    """
    x = x_ref[0]                                                    # (N, TT*F)
    n = x.shape[0]
    q_tot = wt_ref.shape[0]

    # Direct (identity-polynomial) term: x @ (sum of identity weight slices).
    acc = jnp.dot(x, wd_ref[...], preferred_element_type=jnp.float32)   # (N, TT*O) f32

    # Graph propagation for ALL non-identity polynomials in one MXU matmul:
    #   (Q*N, N) @ (N, TT*F) -> (Q*N, TT*F), accumulated in f32.
    prop = jnp.dot(s_ref[...], x, preferred_element_type=jnp.float32)

    # Per-polynomial projection, accumulated in f32; intermediate never leaves VMEM.
    for q in range(q_tot):                                          # static unroll
        pq = prop[q * n:(q + 1) * n, :].astype(wt_ref.dtype)        # (N, TT*F)
        acc = acc + jnp.dot(pq, wt_ref[q], preferred_element_type=jnp.float32)

    o_ref[0] = (acc + b_ref[...]).astype(o_ref.dtype)               # lane-dense store


# --------------------------------------------------------------------------- #
# Wrapper helpers
# --------------------------------------------------------------------------- #
def _block_diag_weights(w, tt):
    """w: (..., F, O) -> (..., tt*F, tt*O), block-diagonal with tt copies of w."""
    f, o = w.shape[-2:]
    lead = w.shape[:-2]
    eye = jnp.eye(tt, dtype=w.dtype)
    blk = eye[:, None, :, None] * w[..., None, :, None, :]          # (..., tt, F, tt, O)
    return blk.reshape(lead + (tt * f, tt * o))


def _vmem_budget_and_limit():
    """Generation-aware (tile_budget_bytes, vmem_limit_bytes).

    v5e/v6e have 128 MiB VMEM per core -> large budget / ~96 MiB limit.
    v7x has 64 MiB -> keep the budget ~28 MiB and the limit capped at 48 MiB.
    Falls back to the conservative (v7x-sized) numbers if the query fails.
    """
    try:
        cap = int(getattr(pltpu.get_tpu_info(), "vmem_capacity_bytes", 64 * _MIB))
    except Exception:                                   # conservative fallback
        cap = 64 * _MIB
    if cap >= 100 * _MIB:                               # v5e / v6e (128 MiB physical)
        return 48 * _MIB, 96 * _MIB
    return 28 * _MIB, 48 * _MIB                         # v7x (64 MiB physical)


def _choose_t_tile(N, T, F, O, Q, in_bytes, out_bytes, w_bytes,
                   budget_bytes, limit_bytes, prefer_chunks=1, resident_bufs=1):
    """Pick a time tile TT dividing T.

    Hard constraints: if TT < T, (TT*F) % 128 == 0 and (TT*O) % 128 == 0 (so blocks
    stay (8,128)-tileable and output stores lane-dense), and the working set
    (double-buffered I/O blocks + single-buffered residents + f32 temporaries)
    fits `budget_bytes`.
    Preferences: >= prefer_chunks time chunks when possible (v7x megacore for
    B == 1), and the largest TT not exceeding a compute-waste soft cap (the
    block-diagonal projection costs TT x the true FLOPs and TT^2 x weight VMEM).
    """
    def need(tt):
        io_blocks = 2 * N * tt * (F * in_bytes + O * out_bytes)     # double-buffered x/out tiles
        residents = resident_bufs * (
            ((Q + 1) * tt * tt * F * O + Q * N * N) * w_bytes + tt * O * 4)
        scratch = (Q * N * tt * F + N * tt * O) * 4                 # f32 prop + acc temporaries
        return io_blocks + residents + scratch

    def ok(tt):
        if T % tt:
            return False
        if tt < T and ((tt * F) % 128 or (tt * O) % 128):
            return False
        return need(tt) <= budget_bytes

    valid = [tt for tt in range(1, T + 1) if ok(tt)]
    if not valid:
        if need(T) <= int(0.9 * limit_bytes):
            return T                                    # over budget but still compilable
        # TODO(synk): pad T*F / T*O up to a multiple of 128 in the wrapper instead of failing.
        raise ValueError(
            "ChebConv: no time tile fits VMEM "
            f"(full-T working set {need(T)} B > limit {limit_bytes} B and no TT < T "
            "satisfies (TT*F) % 128 == 0 and (TT*O) % 128 == 0). "
            "Pad T*F / T*O to a multiple of 128 or add node tiling.")

    # Compute-waste soft cap: keep TT*F in roughly [128, 512] lanes and the padded
    # projection FLOPs below the propagation FLOPs.
    lane_floor = max(1, -(-128 // max(F, 1)))
    lane_cap = max(1, 512 // max(F, 1))
    waste_cap = max(1, (Q * N) // max((Q + 1) * O, 1))
    soft_cap = max(lane_floor, min(lane_cap, waste_cap))

    def pick(cands):
        below = [tt for tt in cands if tt <= soft_cap]
        return max(below) if below else min(cands)

    chunky = [tt for tt in valid if T // tt >= prefer_chunks]
    return pick(chunky) if chunky else pick(valid)


# --------------------------------------------------------------------------- #
# Public entry point
# --------------------------------------------------------------------------- #
def cheb_conv(x, supports, weights, bias, cheb_k, *, compute_dtype=None, out_dtype=None):
    """Pallas ChebConv forward.

    x: (B, N, T, F); supports: list of (N, N); weights: (2*cheb_k*F, O); bias: (O,).
    Returns (B, N, T, O).  For f32 inputs the operands default to bf16 (accumulation
    stays f32); pass compute_dtype=jnp.float32 for bit-accurate f32 math.
    """
    B, N, T, F = x.shape
    O = weights.shape[-1]
    out_dtype = jnp.dtype(out_dtype) if out_dtype is not None else jnp.dtype(x.dtype)
    if compute_dtype is None:
        cdt = (jnp.dtype(jnp.bfloat16) if jnp.dtype(x.dtype) == jnp.dtype(jnp.float32)
               else jnp.dtype(x.dtype))
    else:
        cdt = jnp.dtype(compute_dtype)

    # --- Chebyshev recurrence (tiny sequential N x N matmuls -> plain JAX, f32) ---
    support_set = []
    identity_pos = []
    for support in supports:
        identity_pos.append(len(support_set))
        ks = [jnp.eye(N, dtype=support.dtype), support]
        for _ in range(2, cheb_k):
            ks.append(2.0 * support @ ks[-1] - ks[-2])
        support_set.extend(ks)
    P = len(support_set)
    assert weights.shape[0] == P * F, (weights.shape, P, F)

    # --- fold the identity polynomials into one "direct" weight slice ---
    w3 = weights.reshape(P, F, O)
    id_set = set(identity_pos)
    prop_pos = [p for p in range(P) if p not in id_set]
    Q = len(prop_pos)
    w_dir = w3[identity_pos[0]]
    for p in identity_pos[1:]:
        w_dir = w_dir + w3[p]
    w_prop = jnp.stack([w3[p] for p in prop_pos], axis=0)                   # (Q, F, O)
    s_cat = jnp.concatenate([support_set[p] for p in prop_pos], axis=0)     # (Q*N, N)

    # --- generation-aware VMEM budget and time tiling ---
    in_b = cdt.itemsize
    out_b = out_dtype.itemsize
    budget_bytes, limit_bytes = _vmem_budget_and_limit()
    TT = _choose_t_tile(N, T, F, O, Q, in_b, out_b, in_b,
                        budget_bytes, limit_bytes,
                        prefer_chunks=2 if B == 1 else 1)   # keep both v7x TCs busy
    n_tc = T // TT

    # Block-diagonal projection weights: every in-kernel op stays a plain 2-D
    # matmul on block-shaped tiles and the output store is lane-dense (N, TT*O).
    wt = _block_diag_weights(w_prop.astype(cdt), TT)                        # (Q, TT*F, TT*O)
    wd = _block_diag_weights(w_dir.astype(cdt), TT)                         # (TT*F, TT*O)
    bias_t = jnp.tile(bias.astype(jnp.float32), TT).reshape(1, TT * O)      # (1, TT*O)
    s_cat = s_cat.astype(cdt)
    x_cols = x.astype(cdt).reshape(B, N, T * F)   # free XLA reshape (trailing-dim merge)

    flops = 2 * B * T * N * F * (Q * N + (Q + 1) * O)
    bytes_accessed = int(x_cols.size * in_b + B * N * T * O * out_b
                         + (s_cat.size + wt.size + wd.size) * in_b + bias_t.size * 4)

    def _resident(shape, single):
        nd = len(shape)
        idx = lambda b, t: (0,) * nd                                        # noqa: E731
        kw = dict(pipeline_mode=pl.Buffered(buffer_count=1)) if single else {}
        return pl.BlockSpec(shape, idx, **kw)

    def _build(single_res):
        return pl.pallas_call(
            _fused_cheb_kernel,
            out_shape=jax.ShapeDtypeStruct((B, N, T * O), out_dtype),
            grid=(B, n_tc),
            in_specs=[
                _resident((Q * N, N), single_res),                # supports (resident)
                _resident((Q, TT * F, TT * O), single_res),       # proj weights (resident)
                _resident((TT * F, TT * O), single_res),          # direct weights (resident)
                _resident((1, TT * O), single_res),               # bias (resident)
                pl.BlockSpec((1, N, TT * F), lambda b, t: (b, 0, t)),   # x tile
            ],
            out_specs=pl.BlockSpec((1, N, TT * O), lambda b, t: (b, 0, t)),
            compiler_params=pltpu.CompilerParams(
                dimension_semantics=("parallel", "parallel"),
                vmem_limit_bytes=limit_bytes,
            ),
            cost_estimate=pl.CostEstimate(flops=flops, transcendentals=0,
                                          bytes_accessed=bytes_accessed),
        )

    args = (s_cat, wt, wd, bias_t, x_cols)
    try:
        out2d = _build(True)(*args)    # residents single-buffered -> VMEM headroom
    except Exception:
        # TODO(synk): fallback for jax builds that reject Buffered(1) on the
        # top-level pallas_call pipeline; residents revert to double-buffering.
        out2d = _build(False)(*args)

    return out2d.reshape(B, N, T, O)   # free XLA reshape back to the module layout


# --------------------------------------------------------------------------- #
# Pure-JAX reference mirroring the PyTorch forward exactly
# --------------------------------------------------------------------------- #
def cheb_conv_ref(x, supports, weights, bias, cheb_k):
    N = x.shape[1]
    support_set = []
    for support in supports:
        ks = [jnp.eye(N, dtype=support.dtype), support]
        for _ in range(2, cheb_k):
            ks.append(2.0 * support @ ks[-1] - ks[-2])
        support_set.extend(ks)
    x_perm = jnp.transpose(x, (1, 0, 2, 3))                  # (N, B, T, F)
    x_g = [jnp.einsum('ij,jklm->kilm', s, x_perm) for s in support_set]
    x_g = jnp.concatenate(x_g, axis=-1)                      # (B, N, T, P*F)
    return jnp.einsum('kilm,mo->kilo', x_g, weights) + bias


if __name__ == "__main__":
    # Small, module-consistent shapes.
    B, N, T, F, O, K = 2, 8, 4, 16, 32, 3   # batch, nodes, time_steps_in, feature_size, dim_out, cheb_k

    key = jax.random.PRNGKey(0)
    k1, k2, k3, k4, k5 = jax.random.split(key, 5)

    x = jax.random.normal(k1, (B, N, T, F), dtype=jnp.float32)

    # Two adjacency-like supports (row-normalized), as the module expects
    # (weights shape 2*cheb_k*dim_in implies len(supports) == 2).
    a1 = jax.random.uniform(k2, (N, N), dtype=jnp.float32)
    a2 = jax.random.uniform(k3, (N, N), dtype=jnp.float32)
    a1 = a1 / jnp.sum(a1, axis=1, keepdims=True)
    a2 = a2 / jnp.sum(a2, axis=1, keepdims=True)
    supports = [a1, a2]

    # xavier_normal_-style weights; a small nonzero bias so the bias path is exercised.
    fan_in, fan_out = 2 * K * F, O
    std = (2.0 / (fan_in + fan_out)) ** 0.5
    weights = std * jax.random.normal(k4, (fan_in, fan_out), dtype=jnp.float32)
    bias = 0.1 * jax.random.normal(k5, (O,), dtype=jnp.float32)

    ref = cheb_conv_ref(x, supports, weights, bias, K)

    # Bit-careful path: f32 operands everywhere -> tight tolerance.
    out_f32 = jax.block_until_ready(
        cheb_conv(x, supports, weights, bias, K, compute_dtype=jnp.float32))
    assert out_f32.shape == (B, N, T, O), out_f32.shape
    assert jnp.allclose(out_f32, ref, atol=1e-4, rtol=1e-4), \
        float(jnp.max(jnp.abs(out_f32 - ref)))

    # Default path: bf16 operands with f32 accumulation -> looser tolerance.
    out_bf16 = jax.block_until_ready(cheb_conv(x, supports, weights, bias, K))
    assert out_bf16.shape == (B, N, T, O), out_bf16.shape
    assert jnp.allclose(out_bf16, ref, atol=1e-1, rtol=1e-1), \
        float(jnp.max(jnp.abs(out_bf16 - ref)))

    print("KERNEL_OK")
</pallas_src>

<mosaic_0001>
module attributes {stable_mosaic.version = 11 : i64} {
  func.func @_fused_cheb_kernel(%arg0: i32, %arg1: i32, %arg2: memref<32x8xf32, #tpu.memory_space<vmem>>, %arg3: memref<4x64x128xf32, #tpu.memory_space<vmem>>, %arg4: memref<64x128xf32, #tpu.memory_space<vmem>>, %arg5: memref<1x128xf32, #tpu.memory_space<vmem>>, %arg6: memref<1x8x64xf32, #tpu.memory_space<vmem>>, %arg7: memref<1x8x128xf32, #tpu.memory_space<vmem>>) attributes {dimension_semantics = [#tpu.dimension_semantics<parallel>, #tpu.dimension_semantics<parallel>], iteration_bounds = array<i64: 2, 1>, scalar_prefetch = 0 : i64, scratch_operands = 0 : i64, tpu.core_type = #tpu.core_type<tc>, window_params = [{pipeline_mode = #tpu.pipeline_mode<synchronous>, transform_indices = @transform_0, window_bounds = array<i64: 32, 8>}, {pipeline_mode = #tpu.pipeline_mode<synchronous>, transform_indices = @transform_1, window_bounds = array<i64: 4, 64, 128>}, {pipeline_mode = #tpu.pipeline_mode<synchronous>, transform_indices = @transform_2, window_bounds = array<i64: 64, 128>}, {pipeline_mode = #tpu.pipeline_mode<synchronous>, transform_indices = @transform_3, window_bounds = array<i64: 1, 128>}, {transform_indices = @transform_4, window_bounds = array<i64: 1, 8, 64>}, {transform_indices = @transform_5, window_bounds = array<i64: 1, 8, 128>}]} {
    %c0 = arith.constant 0 : index
    %c0_0 = arith.constant 0 : index
    %c0_1 = arith.constant 0 : index
    %0 = vector.load %arg6[%c0, %c0_0, %c0_1] : memref<1x8x64xf32, #tpu.memory_space<vmem>>, vector<1x8x64xf32>
    %1 = vector.shape_cast %0 : vector<1x8x64xf32> to vector<8x64xf32>
    %c0_2 = arith.constant 0 : index
    %c0_3 = arith.constant 0 : index
    %2 = vector.load %arg4[%c0_2, %c0_3] : memref<64x128xf32, #tpu.memory_space<vmem>>, vector<64x128xf32>
    %cst = arith.constant dense<0.000000e+00> : vector<8x128xf32>
    %3 = tpu.matmul %1, %2, %cst {dimension_numbers = #tpu.dot_dimension_numbers<[1], [0], [0], [1], [0, 0, 1, 1], [], []>} : vector<8x64xf32>, vector<64x128xf32>, vector<8x128xf32> -> vector<8x128xf32>
    %c0_4 = arith.constant 0 : index
    %c0_5 = arith.constant 0 : index
    %4 = vector.load %arg2[%c0_4, %c0_5] : memref<32x8xf32, #tpu.memory_space<vmem>>, vector<32x8xf32>
    %cst_6 = arith.constant dense<0.000000e+00> : vector<32x64xf32>
    %5 = tpu.matmul %4, %1, %cst_6 {dimension_numbers = #tpu.dot_dimension_numbers<[1], [0], [0], [1], [0, 0, 1, 1], [], []>} : vector<32x8xf32>, vector<8x64xf32>, vector<32x64xf32> -> vector<32x64xf32>
    %6 = vector.extract_strided_slice %5 {offsets = [0, 0], sizes = [8, 64], strides = [1, 1]} : vector<32x64xf32> to vector<8x64xf32>
    %c0_7 = arith.constant 0 : index
    %c0_8 = arith.constant 0 : index
    %c0_9 = arith.constant 0 : index
    %7 = vector.load %arg3[%c0_7, %c0_8, %c0_9] : memref<4x64x128xf32, #tpu.memory_space<vmem>>, vector<1x64x128xf32>
    %8 = vector.shape_cast %7 : vector<1x64x128xf32> to vector<64x128xf32>
    %cst_10 = arith.constant dense<0.000000e+00> : vector<8x128xf32>
    %9 = tpu.matmul %6, %8, %cst_10 {dimension_numbers = #tpu.dot_dimension_numbers<[1], [0], [0], [1], [0, 0, 1, 1], [], []>} : vector<8x64xf32>, vector<64x128xf32>, vector<8x128xf32> -> vector<8x128xf32>
    %10 = arith.addf %3, %9 : vector<8x128xf32>
    %11 = vector.extract_strided_slice %5 {offsets = [8, 0], sizes = [8, 64], strides = [1, 1]} : vector<32x64xf32> to vector<8x64xf32>
    %c1 = arith.constant 1 : index
    %c0_11 = arith.constant 0 : index
    %c0_12 = arith.constant 0 : index
    %12 = vector.load %arg3[%c1, %c0_11, %c0_12] : memref<4x64x128xf32, #tpu.memory_space<vmem>>, vector<1x64x128xf32>
    %13 = vector.shape_cast %12 : vector<1x64x128xf32> to vector<64x128xf32>
    %cst_13 = arith.constant dense<0.000000e+00> : vector<8x128xf32>
    %14 = tpu.matmul %11, %13, %cst_13 {dimension_numbers = #tpu.dot_dimension_numbers<[1], [0], [0], [1], [0, 0, 1, 1], [], []>} : vector<8x64xf32>, vector<64x128xf32>, vector<8x128xf32> -> vector<8x128xf32>
    %15 = arith.addf %10, %14 : vector<8x128xf32>
    %16 = vector.extract_strided_slice %5 {offsets = [16, 0], sizes = [8, 64], strides = [1, 1]} : vector<32x64xf32> to vector<8x64xf32>
    %c2 = arith.constant 2 : index
    %c0_14 = arith.constant 0 : index
    %c0_15 = arith.constant 0 : index
    %17 = vector.load %arg3[%c2, %c0_14, %c0_15] : memref<4x64x128xf32, #tpu.memory_space<vmem>>, vector<1x64x128xf32>
    %18 = vector.shape_cast %17 : vector<1x64x128xf32> to vector<64x128xf32>
    %cst_16 = arith.constant dense<0.000000e+00> : vector<8x128xf32>
    %19 = tpu.matmul %16, %18, %cst_16 {dimension_numbers = #tpu.dot_dimension_numbers<[1], [0], [0], [1], [0, 0, 1, 1], [], []>} : vector<8x64xf32>, vector<64x128xf32>, vector<8x128xf32> -> vector<8x128xf32>
    %20 = arith.addf %15, %19 : vector<8x128xf32>
    %21 = vector.extract_strided_slice %5 {offsets = [24, 0], sizes = [8, 64], strides = [1, 1]} : vector<32x64xf32> to vector<8x64xf32>
    %c3 = arith.constant 3 : index
    %c0_17 = arith.constant 0 : index
    %c0_18 = arith.constant 0 : index
    %22 = vector.load %arg3[%c3, %c0_17, %c0_18] : memref<4x64x128xf32, #tpu.memory_space<vmem>>, vector<1x64x128xf32>
    %23 = vector.shape_cast %22 : vector<1x64x128xf32> to vector<64x128xf32>
    %cst_19 = arith.constant dense<0.000000e+00> : vector<8x128xf32>
    %24 = tpu.matmul %21, %23, %cst_19 {dimension_numbers = #tpu.dot_dimension_numbers<[1], [0], [0], [1], [0, 0, 1, 1], [], []>} : vector<8x64xf32>, vector<64x128xf32>, vector<8x128xf32> -> vector<8x128xf32>
    %25 = arith.addf %20, %24 : vector<8x128xf32>
    %c0_20 = arith.constant 0 : index
    %c0_21 = arith.constant 0 : index
    %26 = vector.load %arg5[%c0_20, %c0_21] : memref<1x128xf32, #tpu.memory_space<vmem>>, vector<1x128xf32>
    %27 = vector.broadcast %26 : vector<1x128xf32> to vector<8x128xf32>
    %28 = arith.addf %25, %27 : vector<8x128xf32>
    %c0_22 = arith.constant 0 : index
    %c0_23 = arith.constant 0 : index
    %c0_24 = arith.constant 0 : index
    %29 = vector.load %arg7[%c0_22, %c0_23, %c0_24] : memref<1x8x128xf32, #tpu.memory_space<vmem>>, vector<1x8x128xf32>
    %30 = vector.shape_cast %29 : vector<1x8x128xf32> to vector<8x128xf32>
    %31 = vector.shape_cast %28 : vector<8x128xf32> to vector<1x8x128xf32>
    tpu.vector_store %arg7[%c0_22, %c0_23, %c0_24], %31 {strides = array<i32>} : memref<1x8x128xf32, #tpu.memory_space<vmem>>, vector<1x8x128xf32>,
    return
  }
  func.func @transform_0(%arg0: i32, %arg1: i32) -> (i32, i32) {
    %c0_i32 = arith.constant 0 : i32
    %c0_i32_0 = arith.constant 0 : i32
    %c0_i32_1 = arith.constant 0 : i32
    return %c0_i32, %c0_i32_0 : i32, i32
  }
  func.func @transform_1(%arg0: i32, %arg1: i32) -> (i32, i32, i32) {
    %c0_i32 = arith.constant 0 : i32
    %c0_i32_0 = arith.constant 0 : i32
    %c0_i32_1 = arith.constant 0 : i32
    %c0_i32_2 = arith.constant 0 : i32
    return %c0_i32, %c0_i32_0, %c0_i32_1 : i32, i32, i32
  }
  func.func @transform_2(%arg0: i32, %arg1: i32) -> (i32, i32) {
    %c0_i32 = arith.constant 0 : i32
    %c0_i32_0 = arith.constant 0 : i32
    %c0_i32_1 = arith.constant 0 : i32
    return %c0_i32, %c0_i32_0 : i32, i32
  }
  func.func @transform_3(%arg0: i32, %arg1: i32) -> (i32, i32) {
    %c0_i32 = arith.constant 0 : i32
    %c0_i32_0 = arith.constant 0 : i32
    %c0_i32_1 = arith.constant 0 : i32
    return %c0_i32, %c0_i32_0 : i32, i32
  }
  func.func @transform_4(%arg0: i32, %arg1: i32) -> (i32, i32, i32) {
    %c0_i32 = arith.constant 0 : i32
    %c0_i32_0 = arith.constant 0 : i32
    return %arg0, %c0_i32, %arg1 : i32, i32, i32
  }
  func.func @transform_5(%arg0: i32, %arg1: i32) -> (i32, i32, i32) {
    %c0_i32 = arith.constant 0 : i32
    %c0_i32_0 = arith.constant 0 : i32
    return %arg0, %c0_i32, %arg1 : i32, i32, i32
  }
}

module attributes {stable_mosaic.version = 11 : i64} {
  func.func @_fused_cheb_kernel(%arg0: i32, %arg1: i32, %arg2: memref<32x8xf32, #tpu.memory_space<vmem>>, %arg3: memref<4x64x128xf32, #tpu.memory_space<vmem>>, %arg4: memref<64x128xf32, #tpu.memory_space<vmem>>, %arg5: memref<1x128xf32, #tpu.memory_space<vmem>>, %arg6: memref<1x8x64xf32, #tpu.memory_space<vmem>>, %arg7: memref<1x8x128xf32, #tpu.memory_space<vmem>>) attributes {dimension_semantics = [#tpu.dimension_semantics<parallel>, #tpu.dimension_semantics<parallel>], iteration_bounds = array<i64: 2, 1>, scalar_prefetch = 0 : i64, scratch_operands = 0 : i64, tpu.core_type = #tpu.core_type<tc>, window_params = [{pipeline_mode = #tpu.pipeline_mode<synchronous>, transform_indices = @transform_0, window_bounds = array<i64: 32, 8>}, {pipeline_mode = #tpu.pipeline_mode<synchronous>, transform_indices = @transform_1, window_bounds = array<i64: 4, 64, 128>}, {pipeline_mode = #tpu.pipeline_mode<synchronous>, transform_indices = @transform_2, window_bounds = array<i64: 64, 128>}, {pipeline_mode = #tpu.pipeline_mode<synchronous>, transform_indices = @transform_3, window_bounds = array<i64: 1, 128>}, {transform_indices = @transform_4, window_bounds = array<i64: 1, 8, 64>}, {transform_indices = @transform_5, window_bounds = array<i64: 1, 8, 128>}]} {
    %c0 = arith.constant 0 : index
    %c0_0 = arith.constant 0 : index
    %c0_1 = arith.constant 0 : index
    %0 = vector.load %arg6[%c0, %c0_0, %c0_1] : memref<1x8x64xf32, #tpu.memory_space<vmem>>, vector<1x8x64xf32>
    %1 = vector.shape_cast %0 : vector<1x8x64xf32> to vector<8x64xf32>
    %c0_2 = arith.constant 0 : index
    %c0_3 = arith.constant 0 : index
    %2 = vector.load %arg4[%c0_2, %c0_3] : memref<64x128xf32, #tpu.memory_space<vmem>>, vector<64x128xf32>
    %cst = arith.constant dense<0.000000e+00> : vector<8x128xf32>
    %3 = tpu.matmul %1, %2, %cst {dimension_numbers = #tpu.dot_dimension_numbers<[1], [0], [0], [1], [0, 0, 1, 1], [], []>} : vector<8x64xf32>, vector<64x128xf32>, vector<8x128xf32> -> vector<8x128xf32>
    %c0_4 = arith.constant 0 : index
    %c0_5 = arith.constant 0 : index
    %4 = vector.load %arg2[%c0_4, %c0_5] : memref<32x8xf32, #tpu.memory_space<vmem>>, vector<32x8xf32>
    %cst_6 = arith.constant dense<0.000000e+00> : vector<32x64xf32>
    %5 = tpu.matmul %4, %1, %cst_6 {dimension_numbers = #tpu.dot_dimension_numbers<[1], [0], [0], [1], [0, 0, 1, 1], [], []>} : vector<32x8xf32>, vector<8x64xf32>, vector<32x64xf32> -> vector<32x64xf32>
    %6 = vector.extract_strided_slice %5 {offsets = [0, 0], sizes = [8, 64], strides = [1, 1]} : vector<32x64xf32> to vector<8x64xf32>
    %c0_7 = arith.constant 0 : index
    %c0_8 = arith.constant 0 : index
    %c0_9 = arith.constant 0 : index
    %7 = vector.load %arg3[%c0_7, %c0_8, %c0_9] : memref<4x64x128xf32, #tpu.memory_space<vmem>>, vector<1x64x128xf32>
    %8 = vector.shape_cast %7 : vector<1x64x128xf32> to vector<64x128xf32>
    %cst_10 = arith.constant dense<0.000000e+00> : vector<8x128xf32>
    %9 = tpu.matmul %6, %8, %cst_10 {dimension_numbers = #tpu.dot_dimension_numbers<[1], [0], [0], [1], [0, 0, 1, 1], [], []>} : vector<8x64xf32>, vector<64x128xf32>, vector<8x128xf32> -> vector<8x128xf32>
    %10 = arith.addf %3, %9 : vector<8x128xf32>
    %11 = vector.extract_strided_slice %5 {offsets = [8, 0], sizes = [8, 64], strides = [1, 1]} : vector<32x64xf32> to vector<8x64xf32>
    %c1 = arith.constant 1 : index
    %c0_11 = arith.constant 0 : index
    %c0_12 = arith.constant 0 : index
    %12 = vector.load %arg3[%c1, %c0_11, %c0_12] : memref<4x64x128xf32, #tpu.memory_space<vmem>>, vector<1x64x128xf32>
    %13 = vector.shape_cast %12 : vector<1x64x128xf32> to vector<64x128xf32>
    %cst_13 = arith.constant dense<0.000000e+00> : vector<8x128xf32>
    %14 = tpu.matmul %11, %13, %cst_13 {dimension_numbers = #tpu.dot_dimension_numbers<[1], [0], [0], [1], [0, 0, 1, 1], [], []>} : vector<8x64xf32>, vector<64x128xf32>, vector<8x128xf32> -> vector<8x128xf32>
    %15 = arith.addf %10, %14 : vector<8x128xf32>
    %16 = vector.extract_strided_slice %5 {offsets = [16, 0], sizes = [8, 64], strides = [1, 1]} : vector<32x64xf32> to vector<8x64xf32>
    %c2 = arith.constant 2 : index
    %c0_14 = arith.constant 0 : index
    %c0_15 = arith.constant 0 : index
    %17 = vector.load %arg3[%c2, %c0_14, %c0_15] : memref<4x64x128xf32, #tpu.memory_space<vmem>>, vector<1x64x128xf32>
    %18 = vector.shape_cast %17 : vector<1x64x128xf32> to vector<64x128xf32>
    %cst_16 = arith.constant dense<0.000000e+00> : vector<8x128xf32>
    %19 = tpu.matmul %16, %18, %cst_16 {dimension_numbers = #tpu.dot_dimension_numbers<[1], [0], [0], [1], [0, 0, 1, 1], [], []>} : vector<8x64xf32>, vector<64x128xf32>, vector<8x128xf32> -> vector<8x128xf32>
    %20 = arith.addf %15, %19 : vector<8x128xf32>
    %21 = vector.extract_strided_slice %5 {offsets = [24, 0], sizes = [8, 64], strides = [1, 1]} : vector<32x64xf32> to vector<8x64xf32>
    %c3 = arith.constant 3 : index
    %c0_17 = arith.constant 0 : index
    %c0_18 = arith.constant 0 : index
    %22 = vector.load %arg3[%c3, %c0_17, %c0_18] : memref<4x64x128xf32, #tpu.memory_space<vmem>>, vector<1x64x128xf32>
    %23 = vector.shape_cast %22 : vector<1x64x128xf32> to vector<64x128xf32>
    %cst_19 = arith.constant dense<0.000000e+00> : vector<8x128xf32>
    %24 = tpu.matmul %21, %23, %cst_19 {dimension_numbers = #tpu.dot_dimension_numbers<[1], [0], [0], [1], [0, 0, 1, 1], [], []>} : vector<8x64xf32>, vector<64x128xf32>, vector<8x128xf32> -> vector<8x128xf32>
    %25 = arith.addf %20, %24 : vector<8x128xf32>
    %c0_20 = arith.constant 0 : index
    %c0_21 = arith.constant 0 : index
    %26 = vector.load %arg5[%c0_20, %c0_21] : memref<1x128xf32, #tpu.memory_space<vmem>>, vector<1x128xf32>
    %27 = vector.broadcast %26 : vector<1x128xf32> to vector<8x128xf32>
    %28 = arith.addf %25, %27 : vector<8x128xf32>
    %c0_22 = arith.constant 0 : index
    %c0_23 = arith.constant 0 : index
    %c0_24 = arith.constant 0 : index
    %29 = vector.load %arg7[%c0_22, %c0_23, %c0_24] : memref<1x8x128xf32, #tpu.memory_space<vmem>>, vector<1x8x128xf32>
    %30 = vector.shape_cast %29 : vector<1x8x128xf32> to vector<8x128xf32>
    %31 = vector.shape_cast %28 : vector<8x128xf32> to vector<1x8x128xf32>
    tpu.vector_store %arg7[%c0_22, %c0_23, %c0_24], %31 {strides = array<i32>} : memref<1x8x128xf32, #tpu.memory_space<vmem>>, vector<1x8x128xf32>,
    return
  }
  func.func @transform_0(%arg0: i32, %arg1: i32) -> (i32, i32) {
    %c0_i32 = arith.constant 0 : i32
    %c0_i32_0 = arith.constant 0 : i32
    %c0_i32_1 = arith.constant 0 : i32
    return %c0_i32, %c0_i32_0 : i32, i32
  }
  func.func @transform_1(%arg0: i32, %arg1: i32) -> (i32, i32, i32) {
    %c0_i32 = arith.constant 0 : i32
    %c0_i32_0 = arith.constant 0 : i32
    %c0_i32_1 = arith.constant 0 : i32
    %c0_i32_2 = arith.constant 0 : i32
    return %c0_i32, %c0_i32_0, %c0_i32_1 : i32, i32, i32
  }
  func.func @transform_2(%arg0: i32, %arg1: i32) -> (i32, i32) {
    %c0_i32 = arith.constant 0 : i32
    %c0_i32_0 = arith.constant 0 : i32
    %c0_i32_1 = arith.constant 0 : i32
    return %c0_i32, %c0_i32_0 : i32, i32
  }
  func.func @transform_3(%arg0: i32, %arg1: i32) -> (i32, i32) {
    %c0_i32 = arith.constant 0 : i32
    %c0_i32_0 = arith.constant 0 : i32
    %c0_i32_1 = arith.constant 0 : i32
    return %c0_i32, %c0_i32_0 : i32, i32
  }
  func.func @transform_4(%arg0: i32, %arg1: i32) -> (i32, i32, i32) {
    %c0_i32 = arith.constant 0 : i32
    %c0_i32_0 = arith.constant 0 : i32
    return %arg0, %c0_i32, %arg1 : i32, i32, i32
  }
  func.func @transform_5(%arg0: i32, %arg1: i32) -> (i32, i32, i32) {
    %c0_i32 = arith.constant 0 : i32
    %c0_i32_0 = arith.constant 0 : i32
    return %arg0, %c0_i32, %arg1 : i32, i32, i32
  }
}

</mosaic_0001>

<bundles_post_ra>
// kernel: tpu_custom_call.1
= control target key start
LH: loop header
LB: loop body
LE: loop exit
PB: predicated region body
PF: predicated region fallthrough
CT: control target
= control target key end

     0   :  { %10 = vsyncpa [#allocation3], 0  ;;  %s1644_s0 = inlined_call_operand.vmem [shape: f32[32,8], index: 0, kind: input, shape index: {}]   ;;  %s1645_s1 = inlined_call_operand.hbm [shape: f32[4,64,128], index: 1, kind: input, shape index: {}]   ;;  %s1646_s2 = inlined_call_operand.hbm [shape: f32[64,128], index: 2, kind: input, shape index: {}]   ;;  %s1647_s3 = inlined_call_operand.vmem [shape: f32[1,128], index: 3, kind: input, shape index: {}]   ;;  %s1648_s4 = inlined_call_operand.vmem [shape: f32[2,8,64], index: 4, kind: input, shape index: {}]   ;;  %s1649_s5 = inlined_call_operand.hbm [shape: f32[2,8,128], index: 5, kind: output, shape index: {}]  }
   0x1   :  { %11 = vsyncpa [#allocation6], 0 }
   0x2   :  { %12 = vsyncpa [#allocation4], 0 }
   0x3   :  { %14 = vsyncpa [#allocation4 + $0x1], 0  ;;  %s1408_s18 = smov 0   ;;  %s1410_s19 = smov 0  }
   0x4   :  { %s1412_s20 = smov 0   ;;  %s1414_s21 = smov 0  }
   0x5   :  { %s1416_s22 = smov 0   ;;  %s1418_s23 = smov 0  }
   0x6 LB: > { %s907_s24 = sadd.s32 4294967295, %s1368_s23   ;;  %s908_s25 = sadd.s32 4294967294, %s1368_s23   ;;  %s1368_s23 = sphi %s1418_s23, %s20_s23   ;;  %s1364_s22 = sphi %s1416_s22, %s1670_s22   ;;  %s1360_s21 = sphi %s1414_s21, %s1669_s21   ;;  %s1356_s20 = sphi %s1412_s20, %s1668_s20   ;;  %s1352_s19 = sphi %s1410_s19, %s1667_s19   ;;  %s1348_s18 = sphi %s1408_s18, %s1666_s18  }
   0x7   : > { %s32_s26 = sadd.s32 1, %s1364_s22  ;;  %s153_s27 = sadd.s32 1, %s1356_s20 }
   0x8   : > { %p34_p0 = scmp.ge.s32.totalorder %s32_s26, 2  ;;  %p163_p1 = scmp.ne.s32.totalorder %s1356_s20, %s1352_s19 }
   0x9   : > { %p164_p2 = scmp.eq.s32.totalorder %s907_s24, 1  ;;  %p169_p3 = scmp.ne.s32.totalorder %s1352_s19, %s1348_s18 }
   0xa   : > { %s1672_s26 = smov (%p34_p0, %s32_s26), 0  ;;  %p170_p5 = scmp.eq.s32.totalorder %s908_s25, 1 }
   0xb   : > { %1655 = sst [smem:[#allocation11_spill]] %s1672_s26  ;;  %p1448_p4 = por %p164_p2, %p163_p1 }
   0xc   : > { %s148_s29 = ssub.s32 %s1364_s22, %s1672_s26  ;;  %p909_p6 = scmp.ge.s32.totalorder %s1368_s23, 1 }
   0xd   : > { %s1656_s28 = scalar_select %p1448_p4, 1, 0 }
   0xe   : > { %p151_p7 = scmp.eq.s32.totalorder %s148_s29, 0  ;;  %p1455_p8 = por %p170_p5, %p169_p3 }
   0xf   : > { %p177_p9 = scmp.lt.s32.totalorder %s1368_s23, 3  ;;  %p1467_p11 = scmp.eq.s32.totalorder %s907_s24, 0 }
  0x10   : > { %s1657_s30 = scalar_select %p1455_p8, 1, 0 }
  0x11   : > { %s1461_s6 = scalar_select %p151_p7, %s1356_s20, %s153_s27  }
  0x12   : > { %p1463_p10 = pnand %p909_p6, %p177_p9  ;;  %s1370_s9 = smov [#allocation2]  }
  0x13   : > { %s1659_s8 = scalar_select %p1467_p11, 1, 0 }
  0x14   : > { %s1658_s7 = scalar_select %p1463_p10, 1, 0 }
  0x15   : > { %p1155_p12 = pneg %p1463_p10  ;;  %s192_s10 = sshll.u32 %s1370_s9, 4  ;;  %s193_s10 = int_to_ptr.vmem [resolvable:$true] %s192_s10 }
  0x16   : > { %s1371_s12 = smov [#allocation5]   ;;  %s1226_s16 = scalar_lea.hbm %s1645_s1, 4096 }
  0x17   : > { %p1475_p13 = pnand %p1467_p11, %p1155_p12  ;;  %s205_s13 = sshll.u32 %s1371_s12, 4  ;;  %s1479_s13 = int_to_ptr.vmem [resolvable:$true] %s205_s13 }
  0x18   : > { %p1227_p0 = scmp.ne.s32.totalorder %s1645_s1, %s1226_s16  ;;  %p1233_p5 = scmp.lt.u32.totalorder %s1226_s16, %s1645_s1 }
  0x19   : > { %p1228_p1 = pneg %p1475_p13 }
  0x1b   : > { %p1229_p2 = pnand %p1228_p1, %p1227_p0 }
  0x1d   : > { %p1230_p3 = pneg %p1229_p2 }
  0x1f   : > { %p1235_p6 = pnand %p1233_p5, %p1230_p3 }
  0x21   : > { %1238 = shalt.err (!%p1235_p6)
}
  0x22   : > { %s1239_s29 = scalar_lea.vmem %s193_s10, 4096  ;;  %p1247_p8 = scmp.lt.s32.totalorder %s193_s10, %s193_s10 }
  0x23   : > { %p1240_p7 = scmp.ne.s32.totalorder %s193_s10, %s1239_s29  ;;  %p1248_p4 = scmp.lt.s32.totalorder %s1239_s29, %s1239_s29 }
  0x25   : > { %p1242_p9 = pnand %p1240_p7, %p1228_p1  ;;  %p1249_p11 = por %p1248_p4, %p1247_p8 }
  0x27   : > { %p1243_p12 = pneg %p1242_p9 }
  0x29   : > { %p1250_p10 = pnand %p1249_p11, %p1243_p12 }
  0x2b   : > { %1253 = shalt.err (!%p1250_p10)
}
  0x2c   : > { %s1372_s9 = smov 128   ;;  %s1373_s12 = smov 8  }
  0x2d   : > { %1158 = dma.hbm_to_vmem [thread:$0]  (!%p1475_p13), %s1645_s1, 4096, %s193_s10, [#allocation3], %s1372_s9, %s1372_s9, %s1373_s12  }
  0x2e   : > { %s1254_s24 = scalar_lea.hbm %s1646_s2, 1024 }
  0x2f   : > { %p1255_p0 = scmp.ne.s32.totalorder %s1646_s2, %s1254_s24  ;;  %p1261_p10 = scmp.lt.u32.totalorder %s1254_s24, %s1646_s2 }
  0x31   : > { %p1257_p4 = pnand %p1255_p0, %p1228_p1 }
  0x33   : > { %p1258_p8 = pneg %p1257_p4 }
  0x35   : > { %p1263_p11 = pnand %p1261_p10, %p1258_p8 }
  0x37   : > { %1266 = shalt.err (!%p1263_p11)
}
  0x38   : > { %s1267_s10 = scalar_lea.vmem %s1479_s13, 1024  ;;  %p1275_p6 = scmp.lt.s32.totalorder %s1479_s13, %s1479_s13 }
  0x39   : > { %p1268_p2 = scmp.ne.s32.totalorder %s1479_s13, %s1267_s10  ;;  %p1276_p7 = scmp.lt.s32.totalorder %s1267_s10, %s1267_s10 }
  0x3b   : > { %p1270_p3 = pnand %p1268_p2, %p1228_p1  ;;  %p1277_p9 = por %p1276_p7, %p1275_p6 }
  0x3d   : > { %p1271_p5 = pneg %p1270_p3 }
  0x3f   : > { %p1278_p12 = pnand %p1277_p9, %p1271_p5 }
  0x41   : > { %1281 = shalt.err (!%p1278_p12)
}
  0x42   : > { %1161 = dma.hbm_to_vmem [thread:$0]  (!%p1475_p13), %s1646_s2, 1024, %s1479_s13, [#allocation6], %s1372_s9, %s1372_s9, %s1373_s12  }
  0x43   : > { %p1661_p0 = scmp.ne.s32.totalorder %s1658_s7, 0 }
  0x44   : > { %p1662_p4 = scmp.ne.s32.totalorder (!%p1661_p0), %s1659_s8, 0 }
  0x45   : > { %234 = sbr.rel (%p1661_p0) target bundleno = 563 (0x233), region = 40 }
  0x4c   : > { %1335 = dma.done.wait (%p1662_p4), [#allocation3], 4096  }
  0x4d   : > { %1337 = vsyncadd (%p1662_p4), [#allocation3], 4294963200 }
  0x4e   : > { %1339 = dma.done.wait (%p1662_p4), [#allocation6], 1024  }
  0x4f   : > { %1341 = vsyncadd (%p1662_p4), [#allocation6], 4294966272  ;;  %p268_p1 = scmp.lt.s32.totalorder %s1360_s21, 1  ;;  %v1374_v0 = vmov 0.0|0.0   ;;  %vm288_vm0 = vcmask 64512   ;;  %v284_v2 = vld [vmem:[%s1644_s0] sm:$0xff] }
  0x50   : > { %1085 = vmatprep.subr.bf16.mxu1 %v1374_v0  ;;  %v285_v3 = vld [vmem:[%s1644_s0 + $0x8] sm:$0xff]  ;;  %984 = vmatprep.mubr.msk.f32.mxu0 %vm288_vm0, %v284_v2  ;;  %v286_v4 = vld [vmem:[%s1644_s0 + $0x10] sm:$0xff]  ;;  %v386_v5 = vld [vmem:[#allocation2] sm:$0xff]  ;;  %vm1375_vm1 = vmmov 0   ;;  %v1376_v30 = vmov 0.0   ;;  %vm394_vm2 = vcmask 523264  }
  0x51   : > { %s269_s7 = scalar_select %p268_p1, %s1360_s21, 1  ;;  %v387_v6 = vld [vmem:[#allocation2 + $0x8] sm:$0xff]  ;;  %v276_v7 = vld [vmem:[#allocation5] sm:$0xff]  ;;  %v388_v11 = vld [vmem:[#allocation2 + $0x10] sm:$0xff]  ;;  %1006 = vmatprep.mubr.msk.f32.mxu1 %vm1375_vm1, %v1376_v30 }
  0x52   : > { %v277_v8 = vld [vmem:[#allocation5 + $0x8] sm:$0xff]  ;;  %v1086_v9 = vpack.c.bf16 %v387_v6, %v386_v5  ;;  %v389_v12 = vld [vmem:[#allocation2 + $0x18] sm:$0xff]  ;;  %v278_v13 = vld [vmem:[#allocation5 + $0x10] sm:$0xff]  ;;  %s265_s10 = sand.u32 1, %s1352_s19   ;;  %p1663_p8 = scmp.ne.s32.totalorder %s1656_s28, 0 }
  0x53   : > { %s917_s11 = sshll.u32 %s269_s7, 3  ;;  %v1098_v10 = vpack.c.bf16 %v277_v8, %v276_v7  ;;  %v287_v14 = vld [vmem:[%s1644_s0 + $0x18] sm:$0xff]  ;;  %v1089_v16 = vpack.c.bf16 %v389_v12, %v388_v11  ;;  %v390_v18 = vld [vmem:[#allocation2 + $0x20] sm:$0xff]  ;;  %v391_v19 = vld [vmem:[#allocation2 + $0x28] sm:$0xff]  ;;  %s916_s26 = sshll.u32 %s265_s10, 3 }
  0x54   : > { %s274_s12 = scalar_lea.vmem %s1648_s4, %s917_s11  ;;  %v279_v15 = vld [vmem:[#allocation5 + $0x18] sm:$0xff]  ;;  %1087 = vmatpush3.bf16.msra.mxu1 %v1086_v9  ;;  %v280_v20 = vld [vmem:[#allocation5 + $0x20] sm:$0xff]  ;;  %v281_v21 = vld [vmem:[#allocation5 + $0x28] sm:$0xff]  ;;  %v1092_v22 = vpack.c.bf16 %v391_v19, %v390_v18  ;;  %s929_s11 = sshll.u32 %s1360_s21, 7 }
  0x55   : > { %v275_v1 = vld [vmem:[%s274_s12] sm:$0xff]  ;;  %v1101_v17 = vpack.c.bf16 %v279_v15, %v278_v13  ;;  %1088 = vmatprep.subr.bf16.mxu1 %v1374_v0  ;;  %v1104_v23 = vpack.c.bf16 %v281_v21, %v280_v20  ;;  %v392_v24 = vld [vmem:[#allocation2 + $0x30] sm:$0xff]  ;;  %v393_v25 = vld [vmem:[#allocation2 + $0x38] sm:$0xff]  ;;  %s267_s13 = scalar_lea.vmem [#allocation7], %s916_s26  ;;  %s1597_s16 = scalar_lea.hbm %s1649_s5, %s929_s11 }
  0x56   : > { %982 = vmatprep.subr.mxu0 %v275_v1  ;;  %v282_v26 = vld [vmem:[#allocation5 + $0x30] sm:$0xff]  ;;  %v283_v27 = vld [vmem:[#allocation5 + $0x38] sm:$0xff]  ;;  %v1095_v28 = vpack.c.bf16 %v393_v25, %v392_v24  ;;  %v625_v31 = vld [vmem:[#allocation2 + $0x80] sm:$0xff]  ;;  %s814_s9 = sshll.u32 %s267_s13, 4  ;;  %s800_s8 = scalar_lea.sflag [#allocation4], %s265_s10  ;;  %s1599_s9 = int_to_ptr.vmem [resolvable:$true] %s814_s9 }
  0x57   : > { %983 = vmatpush3.msra.mxu0 %v275_v1  ;;  %v1107_v29 = vpack.c.bf16 %v283_v27, %v282_v26  ;;  %v626_v32 = vld [vmem:[#allocation2 + $0x88] sm:$0xff]  ;;  %v627_v34 = vld [vmem:[#allocation2 + $0x90] sm:$0xff]  ;;  %v628_v35 = vld [vmem:[#allocation2 + $0x98] sm:$0xff]  ;;  %s1282_s17 = scalar_lea.vmem %s1599_s9, 128  ;;  %s1377_s21 = smov [#allocation7]  }
  0x58   : > { %985 = vmatmul.mubr.msk.f32.vlgmr.msra.gmra.mrb[0].mxu0 %vm288_vm0, %v285_v3  ;;  %1097 = vmatprep.subr.bf16.mxu0 %v1374_v0  ;;  %v1122_v33 = vpack.c.bf16 %v626_v32, %v625_v31  ;;  %v1125_v36 = vpack.c.bf16 %v628_v35, %v627_v34  ;;  %v629_v37 = vld [vmem:[#allocation2 + $0xa0] sm:$0xff]  ;;  %v630_v38 = vld [vmem:[#allocation2 + $0xa8] sm:$0xff]  ;;  %v631_v40 = vld [vmem:[#allocation2 + $0xb0] sm:$0xff]  ;;  %p1283_p13 = scmp.ne.s32.totalorder %s1599_s9, %s1282_s17  ;;  %s1286_s24 = sshll.u32 %s1377_s21, 4  ;;  %s1287_s24 = int_to_ptr.vmem [resolvable:$false] %s1286_s24 }
  0x59   : > { %987 = vmatprep.mubr.msk.f32.mxu0 %vm288_vm0, %v286_v4  ;;  %1099 = vmatpush3.bf16.msra.mxu0 %v1098_v10  ;;  %v1128_v39 = vpack.c.bf16 %v630_v38, %v629_v37  ;;  %v632_v41 = vld [vmem:[#allocation2 + $0xb8] sm:$0xff]  ;;  %v542_v43 = vld [vmem:[#allocation2 + $0x40] sm:$0xff]  ;;  %v543_v44 = vld [vmem:[#allocation2 + $0x48] sm:$0xff]  ;;  %s1288_s25 = scalar_lea.vmem %s1287_s24, 256  ;;  %p1289_p2 = scmp.lt.s32.totalorder %s1599_s9, %s1287_s24 }
  0x5a   : > { %1100 = vmatprep.subr.bf16.mxu0 %v1374_v0  ;;  %1090 = vmatpush3.bf16.msra.mxu1 %v1089_v16  ;;  %v1131_v42 = vpack.c.bf16 %v632_v41, %v631_v40  ;;  %v1110_v45 = vpack.c.bf16 %v543_v44, %v542_v43  ;;  %v544_v47 = vld [vmem:[#allocation2 + $0x50] sm:$0xff]  ;;  %v545_v48 = vld [vmem:[#allocation2 + $0x58] sm:$0xff]  ;;  %v546_v51 = vld [vmem:[#allocation2 + $0x60] sm:$0xff]  ;;  %p1284_p10 = pnand %p1283_p13, %p1663_p8  ;;  %p1290_p3 = scmp.lt.s32.totalorder %s1288_s25, %s1282_s17 }
  0x5b   : > { %1091 = vmatprep.subr.bf16.mxu1 %v1374_v0  ;;  %v1113_v50 = vpack.c.bf16 %v545_v48, %v544_v47  ;;  %v547_v52 = vld [vmem:[#allocation2 + $0x68] sm:$0xff]  ;;  %v548_v56 = vld [vmem:[#allocation2 + $0x70] sm:$0xff]  ;;  %v549_v57 = vld [vmem:[#allocation2 + $0x78] sm:$0xff] }
  0x5c   : > { %988 = vmatmul.mubr.msk.f32.gmra.mrb[2].mxu0 %vm288_vm0, %v287_v14  ;;  %v1116_v55 = vpack.c.bf16 %v547_v52, %v546_v51  ;;  %v1119_v58 = vpack.c.bf16 %v549_v57, %v548_v56  ;;  %v708_v59 = vld [vmem:[#allocation2 + $0xc0] sm:$0xff]  ;;  %v709_v60 = vld [vmem:[#allocation2 + $0xc8] sm:$0xff]  ;;  %v710_v62 = vld [vmem:[#allocation2 + $0xd0] sm:$0xff]  ;;  %p1285_p11 = pneg %p1284_p10  ;;  %p1291_p5 = por %p1290_p3, %p1289_p2 }
  0x5d   : > { %1102 = vmatpush3.bf16.msra.mxu0 %v1101_v17  ;;  %1025 = vmatprep.mubr.msk.f32.mxu0 %vm1375_vm1, %v1376_v30  ;;  %v1134_v61 = vpack.c.bf16 %v709_v60, %v708_v59  ;;  %v711_v63 = vld [vmem:[#allocation2 + $0xd8] sm:$0xff]  ;;  %v712_v2 = vld [vmem:[#allocation2 + $0xe0] sm:$0xff]  ;;  %v713_v3 = vld [vmem:[#allocation2 + $0xe8] sm:$0xff] }
  0x5e   : > { %1103 = vmatprep.subr.bf16.mxu0 %v1374_v0  ;;  %1093 = vmatpush3.bf16.msra.mxu1 %v1092_v22  ;;  %v1140_v4 = vpack.c.bf16 %v713_v3, %v712_v2  ;;  %v714_v5 = vld [vmem:[#allocation2 + $0xf0] sm:$0xff]  ;;  %v715_v6 = vld [vmem:[#allocation2 + $0xf8] sm:$0xff]  ;;  %p1292_p6 = pnand %p1291_p5, %p1285_p11 }
  0x5f   : > { %1094 = vmatprep.subr.bf16.mxu1 %v1374_v0  ;;  %v1143_v7 = vpack.c.bf16 %v715_v6, %v714_v5 }
  0x61   : > { %1105 = vmatpush3.bf16.msra.mxu0 %v1104_v23 }
  0x62   : > { %1106 = vmatprep.subr.bf16.mxu0 %v1374_v0  ;;  %1096 = vmatpush3.bf16.msra.mxu1 %v1095_v28 }
  0x63   : > { %1109 = vmatprep.subr.bf16.mxu1 %v1374_v0 }
  0x65   : > { %1108 = vmatpush3.bf16.msra.mxu0 %v1107_v29 }
  0x66   : > { %1121 = vmatprep.subr.bf16.mxu0 %v1374_v0 }
  0x68   : > { %1026 = vmatmul.mubr.msk.f32.vlgmr.msra.gmra.mrb[4].mxu0 %vm394_vm2, %v275_v1  ;;  %v1137_v1 = vpack.c.bf16 %v711_v63, %v710_v62 }
  0x69   : > { %1063 = vmatprep.mubr.msk.f32.mxu0 %vm1375_vm1, %v1376_v30  ;;  %1123 = vmatpush3.bf16.msra.mxu0 %v1122_v33 }
  0x6a   : > { %1124 = vmatprep.subr.bf16.mxu0 %v1374_v0 }
  0x6d   : > { %1126 = vmatpush3.bf16.msra.mxu0 %v1125_v36 }
  0x6e   : > { %1127 = vmatprep.subr.bf16.mxu0 %v1374_v0 }
  0x71   : > { %1129 = vmatpush3.bf16.msra.mxu0 %v1128_v39 }
  0x72   : > { %1130 = vmatprep.subr.bf16.mxu0 %v1374_v0 }
  0x75   : > { %1132 = vmatpush3.bf16.msra.mxu0 %v1131_v42 }
 0x12b   : > { %v986_v46 = vpop.f32.mrb[0].mxu0 }
 0x12c   : > { %v367_v49 = vpop.f32.mrb[1].mxu0 }
 0x12d   : > { %1007 = vmatmul.mubr.msk.f32.vlgmr.msra.gmra.mrb[0].mxu1 %vm394_vm2, %v367_v49 }
 0x12e   : > { %1111 = vmatpush3.bf16.msra.mxu1 %v1110_v45  ;;  %1044 = vmatprep.mubr.msk.f32.mxu1 %vm1375_vm1, %v1376_v30 }
 0x12f   : > { %1112 = vmatprep.subr.bf16.mxu1 %v1374_v0  ;;  %v989_v53 = vpop.f32.mrb[2].mxu0 }
 0x130   : > { %v377_v54 = vpop.f32.mrb[3].mxu0 }
 0x131   : > { %1064 = vmatmul.mubr.msk.f32.vlgmr.msra.gmra.mrb[6].mxu0 %vm394_vm2, %v377_v54 }
 0x132   : > { %1114 = vmatpush3.bf16.msra.mxu1 %v1113_v50 }
 0x133   : > { %1115 = vmatprep.subr.bf16.mxu1 %v1374_v0 }
 0x136   : > { %1117 = vmatpush3.bf16.msra.mxu1 %v1116_v55 }
 0x137   : > { %1118 = vmatprep.subr.bf16.mxu1 %v1374_v0 }
 0x13a   : > { %1120 = vmatpush3.bf16.msra.mxu1 %v1119_v58 }
 0x13b   : > { %1133 = vmatprep.subr.bf16.mxu1 %v1374_v0  ;;  %v537_v8 = vpop.f32.mrb[4].mxu0 }
 0x13c   : > { %v1027_v9 = vpop.f32.mrb[5].mxu0 }
 0x13d   : > { %1045 = vmatmul.mubr.msk.f32.vlgmr.msra.gmra.mrb[2].mxu1 %vm394_vm2, %v986_v46 }
 0x13e   : > { %1135 = vmatpush3.bf16.msra.mxu1 %v1134_v61  ;;  %1082 = vmatprep.mubr.msk.f32.mxu1 %vm1375_vm1, %v1376_v30 }
 0x13f   : > { %1136 = vmatprep.subr.bf16.mxu1 %v1374_v0 }
 0x142   : > { %1138 = vmatpush3.bf16.msra.mxu1 %v1137_v1 }
 0x143   : > { %1139 = vmatprep.subr.bf16.mxu1 %v1374_v0 }
 0x146   : > { %1141 = vmatpush3.bf16.msra.mxu1 %v1140_v4 }
 0x147   : > { %1142 = vmatprep.subr.bf16.mxu1 %v1374_v0  ;;  %v927_v0 = vld [vmem:[%s1647_s3] ss:$0 sm:$0xff] }
 0x14a   : > { %1144 = vmatpush3.bf16.msra.mxu1 %v1143_v7 }
 0x14d   : > { %1083 = vmatmul.mubr.msk.f32.vlgmr.msra.gmra.mrb[4].mxu1 %vm394_vm2, %v989_v53 }
 0x200   : > { %v464_v10 = vpop.f32.mrb[0].mxu1 }
 0x201   : > { %v538_v11 = vadd.f32 %v537_v8, %v464_v10  ;;  %v1008_v12 = vpop.f32.mrb[1].mxu1 }
 0x204   : > { %v702_v13 = vpop.f32.mrb[6].mxu0 }
 0x205   : > { %v1065_v14 = vpop.f32.mrb[7].mxu0 }
 0x210   : > { %v619_v15 = vpop.f32.mrb[2].mxu1 }
 0x211   : > { %v623_v16 = vadd.f32 %v619_v15, %v538_v11  ;;  %v1046_v17 = vpop.f32.mrb[3].mxu1 }
 0x213   : > { %v706_v18 = vadd.f32 %v702_v13, %v623_v16 }
 0x220   : > { %v785_v19 = vpop.f32.mrb[4].mxu1 }
 0x221   : > { %v789_v20 = vadd.f32 %v785_v19, %v706_v18  ;;  %v1084_v21 = vpop.f32.mrb[5].mxu1 }
 0x223   : > { %v797_v22 = vadd.f32 %v927_v0, %v789_v20 }
 0x225   : > { %798 = vst [vmem:[%s267_s13] sm:$0xff] %v797_v22 }
 0x226   : > { %1295 = shalt.err (!%p1292_p6)
}
 0x227   : > { %s1296_s27 = scalar_lea.hbm %s1597_s16, 128  ;;  %s1300_s26 = scalar_lea.hbm %s1649_s5, 256 }
 0x228   : > { %p1297_p7 = scmp.ne.s32.totalorder %s1597_s16, %s1296_s27  ;;  %p1301_p0 = scmp.lt.u32.totalorder %s1597_s16, %s1649_s5 }
 0x229   : > { %p1302_p4 = scmp.lt.u32.totalorder %s1300_s26, %s1296_s27  ;;  %p1304_p13 = scmp.lt.u32.totalorder %s1296_s27, %s1597_s16 }
 0x22a   : > { %p1298_p9 = pnand %p1297_p7, %p1663_p8 }
 0x22b   : > { %p1303_p1 = por %p1302_p4, %p1301_p0 }
 0x22c   : > { %p1299_p12 = pneg %p1298_p9 }
 0x22d   : > { %p1305_p10 = por %p1304_p13, %p1303_p1 }
 0x22f   : > { %p1306_p11 = pnand %p1305_p10, %p1299_p12 }
 0x231   : > { %1309 = shalt.err (!%p1306_p11)
}
 0x232   : > { %1153 = dma.vmem_to_hbm [thread:$0]  (%p1663_p8), %s1599_s9, 128, %s1597_s16, %s800_s8  }
 0x233 PF: > { %p1170_p2 = scmp.ge.s32.totalorder %s1368_s23, 2  ;;  %s826_s11 = sand.u32 1, %s1348_s18  }
 0x234   : > { %p1664_p3 = scmp.ne.s32.totalorder %s1657_s30, 0  ;;  %s827_s13 = scalar_lea.sflag [#allocation4], %s826_s11 }
 0x236   : > { %p1163_p5 = pnand %p1170_p2, %p1664_p3 }
 0x238   : > { %1343 = dma.done.wait (!%p1163_p5), %s827_s13, 128  }
 0x239   : > { %1345 = vsyncadd (!%p1163_p5), %s827_s13, 4294967168  ;;  %s20_s23 = sadd.s32 1, %s1368_s23   ;;  %s1665_s28 = sld [smem:[#allocation11_spill]] }
 0x23a   : > { %p17_p6 = scmp.ge.s32.totalorder %s20_s23, 4   ;;  %s1666_s18 = smov %s1352_s19 }
 0x23b   : > { %s1667_s19 = smov %s1356_s20  ;;  %s1668_s20 = smov %s1461_s6 }
 0x23c   : > { %s1669_s21 = smov %s1364_s22  ;;  %19 = sbr.rel (!%p17_p6) target bundleno = 6 (0x6), region = 87 }
 0x23f   : > { %s1670_s22 = smov %s1665_s28 }
 0x243   :  { %832 = vsyncpa [#allocation3], 1 }
 0x244   :  { %834 = vsyncpa [#allocation3 + $0x1], 1 }
 0x245   :  { %835 = vsyncpa [#allocation6], 1 }
 0x246   :  { %836 = vsyncpa [#allocation4], 1 }
 0x247   :  { %838 = vsyncpa [#allocation4 + $0x1], 1 }

// kernel: tpu_custom_call.1
= control target key start
LH: loop header
LB: loop body
LE: loop exit
PB: predicated region body
PF: predicated region fallthrough
CT: control target
= control target key end

     0   :  { %10 = vsyncpa [#allocation3], 0  ;;  %s1644_s0 = inlined_call_operand.vmem [shape: f32[32,8], index: 0, kind: input, shape index: {}]   ;;  %s1645_s1 = inlined_call_operand.hbm [shape: f32[4,64,128], index: 1, kind: input, shape index: {}]   ;;  %s1646_s2 = inlined_call_operand.hbm [shape: f32[64,128], index: 2, kind: input, shape index: {}]   ;;  %s1647_s3 = inlined_call_operand.vmem [shape: f32[1,128], index: 3, kind: input, shape index: {}]   ;;  %s1648_s4 = inlined_call_operand.vmem [shape: f32[2,8,64], index: 4, kind: input, shape index: {}]   ;;  %s1649_s5 = inlined_call_operand.hbm [shape: f32[2,8,128], index: 5, kind: output, shape index: {}]  }
   0x1   :  { %11 = vsyncpa [#allocation6], 0 }
   0x2   :  { %12 = vsyncpa [#allocation4], 0 }
   0x3   :  { %14 = vsyncpa [#allocation4 + $0x1], 0  ;;  %s1408_s18 = smov 0   ;;  %s1410_s19 = smov 0  }
   0x4   :  { %s1412_s20 = smov 0   ;;  %s1414_s21 = smov 0  }
   0x5   :  { %s1416_s22 = smov 0   ;;  %s1418_s23 = smov 0  }
   0x6 LB: > { %s907_s24 = sadd.s32 4294967295, %s1368_s23   ;;  %s908_s25 = sadd.s32 4294967294, %s1368_s23   ;;  %s1368_s23 = sphi %s1418_s23, %s20_s23   ;;  %s1364_s22 = sphi %s1416_s22, %s1670_s22   ;;  %s1360_s21 = sphi %s1414_s21, %s1669_s21   ;;  %s1356_s20 = sphi %s1412_s20, %s1668_s20   ;;  %s1352_s19 = sphi %s1410_s19, %s1667_s19   ;;  %s1348_s18 = sphi %s1408_s18, %s1666_s18  }
   0x7   : > { %s32_s26 = sadd.s32 1, %s1364_s22  ;;  %s153_s27 = sadd.s32 1, %s1356_s20 }
   0x8   : > { %p34_p0 = scmp.ge.s32.totalorder %s32_s26, 2  ;;  %p163_p1 = scmp.ne.s32.totalorder %s1356_s20, %s1352_s19 }
   0x9   : > { %p164_p2 = scmp.eq.s32.totalorder %s907_s24, 1  ;;  %p169_p3 = scmp.ne.s32.totalorder %s1352_s19, %s1348_s18 }
   0xa   : > { %s1672_s26 = smov (%p34_p0, %s32_s26), 0  ;;  %p170_p5 = scmp.eq.s32.totalorder %s908_s25, 1 }
   0xb   : > { %1655 = sst [smem:[#allocation11_spill]] %s1672_s26  ;;  %p1448_p4 = por %p164_p2, %p163_p1 }
   0xc   : > { %s148_s29 = ssub.s32 %s1364_s22, %s1672_s26  ;;  %p909_p6 = scmp.ge.s32.totalorder %s1368_s23, 1 }
   0xd   : > { %s1656_s28 = scalar_select %p1448_p4, 1, 0 }
   0xe   : > { %p151_p7 = scmp.eq.s32.totalorder %s148_s29, 0  ;;  %p1455_p8 = por %p170_p5, %p169_p3 }
   0xf   : > { %p177_p9 = scmp.lt.s32.totalorder %s1368_s23, 3  ;;  %p1467_p11 = scmp.eq.s32.totalorder %s907_s24, 0 }
  0x10   : > { %s1657_s30 = scalar_select %p1455_p8, 1, 0 }
  0x11   : > { %s1461_s6 = scalar_select %p151_p7, %s1356_s20, %s153_s27  }
  0x12   : > { %p1463_p10 = pnand %p909_p6, %p177_p9  ;;  %s1370_s9 = smov [#allocation2]  }
  0x13   : > { %s1659_s8 = scalar_select %p1467_p11, 1, 0 }
  0x14   : > { %s1658_s7 = scalar_select %p1463_p10, 1, 0 }
  0x15   : > { %p1155_p12 = pneg %p1463_p10  ;;  %s192_s10 = sshll.u32 %s1370_s9, 4  ;;  %s193_s10 = int_to_ptr.vmem [resolvable:$true] %s192_s10 }
  0x16   : > { %s1371_s12 = smov [#allocation5]   ;;  %s1226_s16 = scalar_lea.hbm %s1645_s1, 4096 }
  0x17   : > { %p1475_p13 = pnand %p1467_p11, %p1155_p12  ;;  %s205_s13 = sshll.u32 %s1371_s12, 4  ;;  %s1479_s13 = int_to_ptr.vmem [resolvable:$true] %s205_s13 }
  0x18   : > { %p1227_p0 = scmp.ne.s32.totalorder %s1645_s1, %s1226_s16  ;;  %p1233_p5 = scmp.lt.u32.totalorder %s1226_s16, %s1645_s1 }
  0x19   : > { %p1228_p1 = pneg %p1475_p13 }
  0x1b   : > { %p1229_p2 = pnand %p1228_p1, %p1227_p0 }
  0x1d   : > { %p1230_p3 = pneg %p1229_p2 }
  0x1f   : > { %p1235_p6 = pnand %p1233_p5, %p1230_p3 }
  0x21   : > { %1238 = shalt.err (!%p1235_p6)
}
  0x22   : > { %s1239_s29 = scalar_lea.vmem %s193_s10, 4096  ;;  %p1247_p8 = scmp.lt.s32.totalorder %s193_s10, %s193_s10 }
  0x23   : > { %p1240_p7 = scmp.ne.s32.totalorder %s193_s10, %s1239_s29  ;;  %p1248_p4 = scmp.lt.s32.totalorder %s1239_s29, %s1239_s29 }
  0x25   : > { %p1242_p9 = pnand %p1240_p7, %p1228_p1  ;;  %p1249_p11 = por %p1248_p4, %p1247_p8 }
  0x27   : > { %p1243_p12 = pneg %p1242_p9 }
  0x29   : > { %p1250_p10 = pnand %p1249_p11, %p1243_p12 }
  0x2b   : > { %1253 = shalt.err (!%p1250_p10)
}
  0x2c   : > { %s1372_s9 = smov 128   ;;  %s1373_s12 = smov 8  }
  0x2d   : > { %1158 = dma.hbm_to_vmem [thread:$0]  (!%p1475_p13), %s1645_s1, 4096, %s193_s10, [#allocation3], %s1372_s9, %s1372_s9, %s1373_s12  }
  0x2e   : > { %s1254_s24 = scalar_lea.hbm %s1646_s2, 1024 }
  0x2f   : > { %p1255_p0 = scmp.ne.s32.totalorder %s1646_s2, %s1254_s24  ;;  %p1261_p10 = scmp.lt.u32.totalorder %s1254_s24, %s1646_s2 }
  0x31   : > { %p1257_p4 = pnand %p1255_p0, %p1228_p1 }
  0x33   : > { %p1258_p8 = pneg %p1257_p4 }
  0x35   : > { %p1263_p11 = pnand %p1261_p10, %p1258_p8 }
  0x37   : > { %1266 = shalt.err (!%p1263_p11)
}
  0x38   : > { %s1267_s10 = scalar_lea.vmem %s1479_s13, 1024  ;;  %p1275_p6 = scmp.lt.s32.totalorder %s1479_s13, %s1479_s13 }
  0x39   : > { %p1268_p2 = scmp.ne.s32.totalorder %s1479_s13, %s1267_s10  ;;  %p1276_p7 = scmp.lt.s32.totalorder %s1267_s10, %s1267_s10 }
  0x3b   : > { %p1270_p3 = pnand %p1268_p2, %p1228_p1  ;;  %p1277_p9 = por %p1276_p7, %p1275_p6 }
  0x3d   : > { %p1271_p5 = pneg %p1270_p3 }
  0x3f   : > { %p1278_p12 = pnand %p1277_p9, %p1271_p5 }
  0x41   : > { %1281 = shalt.err (!%p1278_p12)
}
  0x42   : > { %1161 = dma.hbm_to_vmem [thread:$0]  (!%p1475_p13), %s1646_s2, 1024, %s1479_s13, [#allocation6], %s1372_s9, %s1372_s9, %s1373_s12  }
  0x43   : > { %p1661_p0 = scmp.ne.s32.totalorder %s1658_s7, 0 }
  0x44   : > { %p1662_p4 = scmp.ne.s32.totalorder (!%p1661_p0), %s1659_s8, 0 }
  0x45   : > { %234 = sbr.rel (%p1661_p0) target bundleno = 563 (0x233), region = 40 }
  0x4c   : > { %1335 = dma.done.wait (%p1662_p4), [#allocation3], 4096  }
  0x4d   : > { %1337 = vsyncadd (%p1662_p4), [#allocation3], 4294963200 }
  0x4e   : > { %1339 = dma.done.wait (%p1662_p4), [#allocation6], 1024  }
  0x4f   : > { %1341 = vsyncadd (%p1662_p4), [#allocation6], 4294966272  ;;  %p268_p1 = scmp.lt.s32.totalorder %s1360_s21, 1  ;;  %v1374_v0 = vmov 0.0|0.0   ;;  %vm288_vm0 = vcmask 64512   ;;  %v284_v2 = vld [vmem:[%s1644_s0] sm:$0xff] }
  0x50   : > { %1085 = vmatprep.subr.bf16.mxu1 %v1374_v0  ;;  %v285_v3 = vld [vmem:[%s1644_s0 + $0x8] sm:$0xff]  ;;  %984 = vmatprep.mubr.msk.f32.mxu0 %vm288_vm0, %v284_v2  ;;  %v286_v4 = vld [vmem:[%s1644_s0 + $0x10] sm:$0xff]  ;;  %v386_v5 = vld [vmem:[#allocation2] sm:$0xff]  ;;  %vm1375_vm1 = vmmov 0   ;;  %v1376_v30 = vmov 0.0   ;;  %vm394_vm2 = vcmask 523264  }
  0x51   : > { %s269_s7 = scalar_select %p268_p1, %s1360_s21, 1  ;;  %v387_v6 = vld [vmem:[#allocation2 + $0x8] sm:$0xff]  ;;  %v276_v7 = vld [vmem:[#allocation5] sm:$0xff]  ;;  %v388_v11 = vld [vmem:[#allocation2 + $0x10] sm:$0xff]  ;;  %1006 = vmatprep.mubr.msk.f32.mxu1 %vm1375_vm1, %v1376_v30 }
  0x52   : > { %v277_v8 = vld [vmem:[#allocation5 + $0x8] sm:$0xff]  ;;  %v1086_v9 = vpack.c.bf16 %v387_v6, %v386_v5  ;;  %v389_v12 = vld [vmem:[#allocation2 + $0x18] sm:$0xff]  ;;  %v278_v13 = vld [vmem:[#allocation5 + $0x10] sm:$0xff]  ;;  %s265_s10 = sand.u32 1, %s1352_s19   ;;  %p1663_p8 = scmp.ne.s32.totalorder %s1656_s28, 0 }
  0x53   : > { %s917_s11 = sshll.u32 %s269_s7, 3  ;;  %v1098_v10 = vpack.c.bf16 %v277_v8, %v276_v7  ;;  %v287_v14 = vld [vmem:[%s1644_s0 + $0x18] sm:$0xff]  ;;  %v1089_v16 = vpack.c.bf16 %v389_v12, %v388_v11  ;;  %v390_v18 = vld [vmem:[#allocation2 + $0x20] sm:$0xff]  ;;  %v391_v19 = vld [vmem:[#allocation2 + $0x28] sm:$0xff]  ;;  %s916_s26 = sshll.u32 %s265_s10, 3 }
  0x54   : > { %s274_s12 = scalar_lea.vmem %s1648_s4, %s917_s11  ;;  %v279_v15 = vld [vmem:[#allocation5 + $0x18] sm:$0xff]  ;;  %1087 = vmatpush3.bf16.msra.mxu1 %v1086_v9  ;;  %v280_v20 = vld [vmem:[#allocation5 + $0x20] sm:$0xff]  ;;  %v281_v21 = vld [vmem:[#allocation5 + $0x28] sm:$0xff]  ;;  %v1092_v22 = vpack.c.bf16 %v391_v19, %v390_v18  ;;  %s929_s11 = sshll.u32 %s1360_s21, 7 }
  0x55   : > { %v275_v1 = vld [vmem:[%s274_s12] sm:$0xff]  ;;  %v1101_v17 = vpack.c.bf16 %v279_v15, %v278_v13  ;;  %1088 = vmatprep.subr.bf16.mxu1 %v1374_v0  ;;  %v1104_v23 = vpack.c.bf16 %v281_v21, %v280_v20  ;;  %v392_v24 = vld [vmem:[#allocation2 + $0x30] sm:$0xff]  ;;  %v393_v25 = vld [vmem:[#allocation2 + $0x38] sm:$0xff]  ;;  %s267_s13 = scalar_lea.vmem [#allocation7], %s916_s26  ;;  %s1597_s16 = scalar_lea.hbm %s1649_s5, %s929_s11 }
  0x56   : > { %982 = vmatprep.subr.mxu0 %v275_v1  ;;  %v282_v26 = vld [vmem:[#allocation5 + $0x30] sm:$0xff]  ;;  %v283_v27 = vld [vmem:[#allocation5 + $0x38] sm:$0xff]  ;;  %v1095_v28 = vpack.c.bf16 %v393_v25, %v392_v24  ;;  %v625_v31 = vld [vmem:[#allocation2 + $0x80] sm:$0xff]  ;;  %s814_s9 = sshll.u32 %s267_s13, 4  ;;  %s800_s8 = scalar_lea.sflag [#allocation4], %s265_s10  ;;  %s1599_s9 = int_to_ptr.vmem [resolvable:$true] %s814_s9 }
  0x57   : > { %983 = vmatpush3.msra.mxu0 %v275_v1  ;;  %v1107_v29 = vpack.c.bf16 %v283_v27, %v282_v26  ;;  %v626_v32 = vld [vmem:[#allocation2 + $0x88] sm:$0xff]  ;;  %v627_v34 = vld [vmem:[#allocation2 + $0x90] sm:$0xff]  ;;  %v628_v35 = vld [vmem:[#allocation2 + $0x98] sm:$0xff]  ;;  %s1282_s17 = scalar_lea.vmem %s1599_s9, 128  ;;  %s1377_s21 = smov [#allocation7]  }
  0x58   : > { %985 = vmatmul.mubr.msk.f32.vlgmr.msra.gmra.mrb[0].mxu0 %vm288_vm0, %v285_v3  ;;  %1097 = vmatprep.subr.bf16.mxu0 %v1374_v0  ;;  %v1122_v33 = vpack.c.bf16 %v626_v32, %v625_v31  ;;  %v1125_v36 = vpack.c.bf16 %v628_v35, %v627_v34  ;;  %v629_v37 = vld [vmem:[#allocation2 + $0xa0] sm:$0xff]  ;;  %v630_v38 = vld [vmem:[#allocation2 + $0xa8] sm:$0xff]  ;;  %v631_v40 = vld [vmem:[#allocation2 + $0xb0] sm:$0xff]  ;;  %p1283_p13 = scmp.ne.s32.totalorder %s1599_s9, %s1282_s17  ;;  %s1286_s24 = sshll.u32 %s1377_s21, 4  ;;  %s1287_s24 = int_to_ptr.vmem [resolvable:$false] %s1286_s24 }
  0x59   : > { %987 = vmatprep.mubr.msk.f32.mxu0 %vm288_vm0, %v286_v4  ;;  %1099 = vmatpush3.bf16.msra.mxu0 %v1098_v10  ;;  %v1128_v39 = vpack.c.bf16 %v630_v38, %v629_v37  ;;  %v632_v41 = vld [vmem:[#allocation2 + $0xb8] sm:$0xff]  ;;  %v542_v43 = vld [vmem:[#allocation2 + $0x40] sm:$0xff]  ;;  %v543_v44 = vld [vmem:[#allocation2 + $0x48] sm:$0xff]  ;;  %s1288_s25 = scalar_lea.vmem %s1287_s24, 256  ;;  %p1289_p2 = scmp.lt.s32.totalorder %s1599_s9, %s1287_s24 }
  0x5a   : > { %1100 = vmatprep.subr.bf16.mxu0 %v1374_v0  ;;  %1090 = vmatpush3.bf16.msra.mxu1 %v1089_v16  ;;  %v1131_v42 = vpack.c.bf16 %v632_v41, %v631_v40  ;;  %v1110_v45 = vpack.c.bf16 %v543_v44, %v542_v43  ;;  %v544_v47 = vld [vmem:[#allocation2 + $0x50] sm:$0xff]  ;;  %v545_v48 = vld [vmem:[#allocation2 + $0x58] sm:$0xff]  ;;  %v546_v51 = vld [vmem:[#allocation2 + $0x60] sm:$0xff]  ;;  %p1284_p10 = pnand %p1283_p13, %p1663_p8  ;;  %p1290_p3 = scmp.lt.s32.totalorder %s1288_s25, %s1282_s17 }
  0x5b   : > { %1091 = vmatprep.subr.bf16.mxu1 %v1374_v0  ;;  %v1113_v50 = vpack.c.bf16 %v545_v48, %v544_v47  ;;  %v547_v52 = vld [vmem:[#allocation2 + $0x68] sm:$0xff]  ;;  %v548_v56 = vld [vmem:[#allocation2 + $0x70] sm:$0xff]  ;;  %v549_v57 = vld [vmem:[#allocation2 + $0x78] sm:$0xff] }
  0x5c   : > { %988 = vmatmul.mubr.msk.f32.gmra.mrb[2].mxu0 %vm288_vm0, %v287_v14  ;;  %v1116_v55 = vpack.c.bf16 %v547_v52, %v546_v51  ;;  %v1119_v58 = vpack.c.bf16 %v549_v57, %v548_v56  ;;  %v708_v59 = vld [vmem:[#allocation2 + $0xc0] sm:$0xff]  ;;  %v709_v60 = vld [vmem:[#allocation2 + $0xc8] sm:$0xff]  ;;  %v710_v62 = vld [vmem:[#allocation2 + $0xd0] sm:$0xff]  ;;  %p1285_p11 = pneg %p1284_p10  ;;  %p1291_p5 = por %p1290_p3, %p1289_p2 }
  0x5d   : > { %1102 = vmatpush3.bf16.msra.mxu0 %v1101_v17  ;;  %1025 = vmatprep.mubr.msk.f32.mxu0 %vm1375_vm1, %v1376_v30  ;;  %v1134_v61 = vpack.c.bf16 %v709_v60, %v708_v59  ;;  %v711_v63 = vld [vmem:[#allocation2 + $0xd8] sm:$0xff]  ;;  %v712_v2 = vld [vmem:[#allocation2 + $0xe0] sm:$0xff]  ;;  %v713_v3 = vld [vmem:[#allocation2 + $0xe8] sm:$0xff] }
  0x5e   : > { %1103 = vmatprep.subr.bf16.mxu0 %v1374_v0  ;;  %1093 = vmatpush3.bf16.msra.mxu1 %v1092_v22  ;;  %v1140_v4 = vpack.c.bf16 %v713_v3, %v712_v2  ;;  %v714_v5 = vld [vmem:[#allocation2 + $0xf0] sm:$0xff]  ;;  %v715_v6 = vld [vmem:[#allocation2 + $0xf8] sm:$0xff]  ;;  %p1292_p6 = pnand %p1291_p5, %p1285_p11 }
  0x5f   : > { %1094 = vmatprep.subr.bf16.mxu1 %v1374_v0  ;;  %v1143_v7 = vpack.c.bf16 %v715_v6, %v714_v5 }
  0x61   : > { %1105 = vmatpush3.bf16.msra.mxu0 %v1104_v23 }
  0x62   : > { %1106 = vmatprep.subr.bf16.mxu0 %v1374_v0  ;;  %1096 = vmatpush3.bf16.msra.mxu1 %v1095_v28 }
  0x63   : > { %1109 = vmatprep.subr.bf16.mxu1 %v1374_v0 }
  0x65   : > { %1108 = vmatpush3.bf16.msra.mxu0 %v1107_v29 }
  0x66   : > { %1121 = vmatprep.subr.bf16.mxu0 %v1374_v0 }
  0x68   : > { %1026 = vmatmul.mubr.msk.f32.vlgmr.msra.gmra.mrb[4].mxu0 %vm394_vm2, %v275_v1  ;;  %v1137_v1 = vpack.c.bf16 %v711_v63, %v710_v62 }
  0x69   : > { %1063 = vmatprep.mubr.msk.f32.mxu0 %vm1375_vm1, %v1376_v30  ;;  %1123 = vmatpush3.bf16.msra.mxu0 %v1122_v33 }
  0x6a   : > { %1124 = vmatprep.subr.bf16.mxu0 %v1374_v0 }
  0x6d   : > { %1126 = vmatpush3.bf16.msra.mxu0 %v1125_v36 }
  0x6e   : > { %1127 = vmatprep.subr.bf16.mxu0 %v1374_v0 }
  0x71   : > { %1129 = vmatpush3.bf16.msra.mxu0 %v1128_v39 }
  0x72   : > { %1130 = vmatprep.subr.bf16.mxu0 %v1374_v0 }
  0x75   : > { %1132 = vmatpush3.bf16.msra.mxu0 %v1131_v42 }
 0x12b   : > { %v986_v46 = vpop.f32.mrb[0].mxu0 }
 0x12c   : > { %v367_v49 = vpop.f32.mrb[1].mxu0 }
 0x12d   : > { %1007 = vmatmul.mubr.msk.f32.vlgmr.msra.gmra.mrb[0].mxu1 %vm394_vm2, %v367_v49 }
 0x12e   : > { %1111 = vmatpush3.bf16.msra.mxu1 %v1110_v45  ;;  %1044 = vmatprep.mubr.msk.f32.mxu1 %vm1375_vm1, %v1376_v30 }
 0x12f   : > { %1112 = vmatprep.subr.bf16.mxu1 %v1374_v0  ;;  %v989_v53 = vpop.f32.mrb[2].mxu0 }
 0x130   : > { %v377_v54 = vpop.f32.mrb[3].mxu0 }
 0x131   : > { %1064 = vmatmul.mubr.msk.f32.vlgmr.msra.gmra.mrb[6].mxu0 %vm394_vm2, %v377_v54 }
 0x132   : > { %1114 = vmatpush3.bf16.msra.mxu1 %v1113_v50 }
 0x133   : > { %1115 = vmatprep.subr.bf16.mxu1 %v1374_v0 }
 0x136   : > { %1117 = vmatpush3.bf16.msra.mxu1 %v1116_v55 }
 0x137   : > { %1118 = vmatprep.subr.bf16.mxu1 %v1374_v0 }
 0x13a   : > { %1120 = vmatpush3.bf16.msra.mxu1 %v1119_v58 }
 0x13b   : > { %1133 = vmatprep.subr.bf16.mxu1 %v1374_v0  ;;  %v537_v8 = vpop.f32.mrb[4].mxu0 }
 0x13c   : > { %v1027_v9 = vpop.f32.mrb[5].mxu0 }
 0x13d   : > { %1045 = vmatmul.mubr.msk.f32.vlgmr.msra.gmra.mrb[2].mxu1 %vm394_vm2, %v986_v46 }
 0x13e   : > { %1135 = vmatpush3.bf16.msra.mxu1 %v1134_v61  ;;  %1082 = vmatprep.mubr.msk.f32.mxu1 %vm1375_vm1, %v1376_v30 }
 0x13f   : > { %1136 = vmatprep.subr.bf16.mxu1 %v1374_v0 }
 0x142   : > { %1138 = vmatpush3.bf16.msra.mxu1 %v1137_v1 }
 0x143   : > { %1139 = vmatprep.subr.bf16.mxu1 %v1374_v0 }
 0x146   : > { %1141 = vmatpush3.bf16.msra.mxu1 %v1140_v4 }
 0x147   : > { %1142 = vmatprep.subr.bf16.mxu1 %v1374_v0  ;;  %v927_v0 = vld [vmem:[%s1647_s3] ss:$0 sm:$0xff] }
 0x14a   : > { %1144 = vmatpush3.bf16.msra.mxu1 %v1143_v7 }
 0x14d   : > { %1083 = vmatmul.mubr.msk.f32.vlgmr.msra.gmra.mrb[4].mxu1 %vm394_vm2, %v989_v53 }
 0x200   : > { %v464_v10 = vpop.f32.mrb[0].mxu1 }
 0x201   : > { %v538_v11 = vadd.f32 %v537_v8, %v464_v10  ;;  %v1008_v12 = vpop.f32.mrb[1].mxu1 }
 0x204   : > { %v702_v13 = vpop.f32.mrb[6].mxu0 }
 0x205   : > { %v1065_v14 = vpop.f32.mrb[7].mxu0 }
 0x210   : > { %v619_v15 = vpop.f32.mrb[2].mxu1 }
 0x211   : > { %v623_v16 = vadd.f32 %v619_v15, %v538_v11  ;;  %v1046_v17 = vpop.f32.mrb[3].mxu1 }
 0x213   : > { %v706_v18 = vadd.f32 %v702_v13, %v623_v16 }
 0x220   : > { %v785_v19 = vpop.f32.mrb[4].mxu1 }
 0x221   : > { %v789_v20 = vadd.f32 %v785_v19, %v706_v18  ;;  %v1084_v21 = vpop.f32.mrb[5].mxu1 }
 0x223   : > { %v797_v22 = vadd.f32 %v927_v0, %v789_v20 }
 0x225   : > { %798 = vst [vmem:[%s267_s13] sm:$0xff] %v797_v22 }
 0x226   : > { %1295 = shalt.err (!%p1292_p6)
}
 0x227   : > { %s1296_s27 = scalar_lea.hbm %s1597_s16, 128  ;;  %s1300_s26 = scalar_lea.hbm %s1649_s5, 256 }
 0x228   : > { %p1297_p7 = scmp.ne.s32.totalorder %s1597_s16, %s1296_s27  ;;  %p1301_p0 = scmp.lt.u32.totalorder %s1597_s16, %s1649_s5 }
 0x229   : > { %p1302_p4 = scmp.lt.u32.totalorder %s1300_s26, %s1296_s27  ;;  %p1304_p13 = scmp.lt.u32.totalorder %s1296_s27, %s1597_s16 }
 0x22a   : > { %p1298_p9 = pnand %p1297_p7, %p1663_p8 }
 0x22b   : > { %p1303_p1 = por %p1302_p4, %p1301_p0 }
 0x22c   : > { %p1299_p12 = pneg %p1298_p9 }
 0x22d   : > { %p1305_p10 = por %p1304_p13, %p1303_p1 }
 0x22f   : > { %p1306_p11 = pnand %p1305_p10, %p1299_p12 }
 0x231   : > { %1309 = shalt.err (!%p1306_p11)
}
 0x232   : > { %1153 = dma.vmem_to_hbm [thread:$0]  (%p1663_p8), %s1599_s9, 128, %s1597_s16, %s800_s8  }
 0x233 PF: > { %p1170_p2 = scmp.ge.s32.totalorder %s1368_s23, 2  ;;  %s826_s11 = sand.u32 1, %s1348_s18  }
 0x234   : > { %p1664_p3 = scmp.ne.s32.totalorder %s1657_s30, 0  ;;  %s827_s13 = scalar_lea.sflag [#allocation4], %s826_s11 }
 0x236   : > { %p1163_p5 = pnand %p1170_p2, %p1664_p3 }
 0x238   : > { %1343 = dma.done.wait (!%p1163_p5), %s827_s13, 128  }
 0x239   : > { %1345 = vsyncadd (!%p1163_p5), %s827_s13, 4294967168  ;;  %s20_s23 = sadd.s32 1, %s1368_s23   ;;  %s1665_s28 = sld [smem:[#allocation11_spill]] }
 0x23a   : > { %p17_p6 = scmp.ge.s32.totalorder %s20_s23, 4   ;;  %s1666_s18 = smov %s1352_s19 }
 0x23b   : > { %s1667_s19 = smov %s1356_s20  ;;  %s1668_s20 = smov %s1461_s6 }
 0x23c   : > { %s1669_s21 = smov %s1364_s22  ;;  %19 = sbr.rel (!%p17_p6) target bundleno = 6 (0x6), region = 87 }
 0x23f   : > { %s1670_s22 = smov %s1665_s28 }
 0x243   :  { %832 = vsyncpa [#allocation3], 1 }
 0x244   :  { %834 = vsyncpa [#allocation3 + $0x1], 1 }
 0x245   :  { %835 = vsyncpa [#allocation6], 1 }
 0x246   :  { %836 = vsyncpa [#allocation4], 1 }
 0x247   :  { %838 = vsyncpa [#allocation4 + $0x1], 1 }

</bundles_post_ra>
